<compile_context>
chip_gen: v5e
topology: v5e:2x2
jax: 0.10.0
libtpu: 0.0.40
codegen_flags: <defaults>
</compile_context>

<pallas_src>
import jax
import jax.numpy as jnp
from jax.experimental import pallas as pl
from jax.experimental.pallas import tpu as pltpu

C_FEAT = 512      # vgg feature channels (512 * expand, expand == 1)
NUM_CLASS = 1     # cfg.num_classes = [1]
LANE = 128


def _head_kernel(x_ref, w_ref, b_ref, logit_ref):
    """Grid = (N tiles,), all "parallel".

    x_ref:     (TN, R, 128)  feature rows, channel+spatial flattened onto the
                             lane axis (any float dtype; upcast to f32 here).
    w_ref:     (R, 128) f32  pre-expanded 1x1-conv weight, already scaled by
                             1/HW (fuses the AVG global pool).  Constant
                             index_map => VMEM resident across grid steps.
    b_ref:     (1,) f32      bias scalar in SMEM.
    logit_ref: (TN, 1, 1)    output block.
    """
    x = x_ref[...].astype(jnp.float32)              # (TN, R, 128)
    prod = x * w_ref[...]                           # VPU, broadcasts over TN
    s = jnp.sum(prod, axis=2, keepdims=True)        # lane reduce   -> (TN, R, 1)
    s = jnp.sum(s, axis=1, keepdims=True)           # sublane reduce-> (TN, 1, 1)
    logit_ref[...] = s + b_ref[0]


def single_class_classifier_forward(feat_map_nchw, w_conv, b_conv):
    """feat_map_nchw: (N, C, H, W) backbone feature map (PyTorch NCHW layout),
    f32 or bf16.  w_conv: (K, C, 1, 1) Conv2d weight;  b_conv: (K,) bias.
    Returns logits with SingleClassClassifier.forward semantics for
    chexpert_dataset_type == 'pos' (shape (N,) after the final squeeze)."""
    N, C, H, W = feat_map_nchw.shape
    K = w_conv.shape[0]
    assert K == 1, "SingleClassClassifier config uses cfg.num_classes = [1]"
    HW = H * W
    D = C * HW

    # Lane-dense flattening.  reshape of NCHW is contiguous -> no extra HBM pass.
    Dp = pl.cdiv(D, LANE) * LANE
    R = Dp // LANE
    x_flat = feat_map_nchw.reshape(N, D)
    # Fuse the 1/HW AVG-pool scale into the pre-expanded weight.
    w_exp = jnp.repeat(w_conv.reshape(K, C)[0].astype(jnp.float32) / HW, HW)  # (D,)
    if Dp != D:   # never hit for real backbones (C is a multiple of 128)
        x_flat = jnp.pad(x_flat, ((0, 0), (0, Dp - D)))
        w_exp = jnp.pad(w_exp, (0, Dp - D))
    x3 = x_flat.reshape(N, R, LANE)
    w2 = w_exp.reshape(R, LANE)
    b = b_conv.reshape(K).astype(jnp.float32)       # (1,) -> SMEM

    # N tile (leading block dim, unconstrained):
    #   * at least 2 grid blocks when N >= 2 so v7x's 2 TensorCores both work,
    #   * at most 8 rows, and capped so one block is <= ~6 MiB (double-buffered
    #     comfortably inside v7x's 64 MiB / default scoped VMEM).
    row_bytes = R * LANE * x3.dtype.itemsize
    tn_vmem_cap = max(1, (6 * 1024 * 1024) // row_bytes)
    tn = max(1, min(8, pl.cdiv(N, 2), tn_vmem_cap))
    grid = (pl.cdiv(N, tn),)

    logit = pl.pallas_call(
        _head_kernel,
        out_shape=jax.ShapeDtypeStruct((N, 1, 1), jnp.float32),
        grid_spec=pltpu.PrefetchScalarGridSpec(
            num_scalar_prefetch=0,
            grid=grid,
            in_specs=[
                pl.BlockSpec((tn, R, LANE), lambda n: (n, 0, 0)),
                pl.BlockSpec((R, LANE), lambda n: (0, 0)),
                pl.BlockSpec(memory_space=pltpu.MemorySpace.SMEM),
            ],
            out_specs=pl.BlockSpec((tn, 1, 1), lambda n: (n, 0, 0)),
        ),
        compiler_params=pltpu.CompilerParams(
            dimension_semantics=("parallel",),
            vmem_limit_bytes=48 * 1024 * 1024,
        ),
    )(x3, w2, b)

    # chexpert_dataset_type == 'pos': logits = logits[0]; logits = logits.squeeze()
    return jnp.squeeze(logit)


if __name__ == "__main__":
    key = jax.random.PRNGKey(0)
    k_feat, k_w = jax.random.split(key)

    N, H, W = 2, 8, 8
    # Backbone feature-map stand-in (NCHW, as produced by the torch backbone).
    feat_map = jax.random.normal(k_feat, (N, C_FEAT, H, W), dtype=jnp.float32)

    # nn.Conv2d(512, 1, kernel_size=1): weight ~ N(0, 0.01), bias zeroed.
    w_conv = 0.01 * jax.random.normal(
        k_w, (NUM_CLASS, C_FEAT, 1, 1), dtype=jnp.float32)
    b_conv = jnp.zeros((NUM_CLASS,), dtype=jnp.float32)

    logits = jax.block_until_ready(
        single_class_classifier_forward(feat_map, w_conv, b_conv))

    # Pure-JAX reference of the same head.
    feat_ref = jnp.mean(feat_map, axis=(2, 3))                     # (N, C)
    logit_ref = feat_ref @ w_conv[:, :, 0, 0].T + b_conv           # (N, K)
    logit_ref = jnp.squeeze(logit_ref)

    assert logits.shape == (N,)
    assert jnp.allclose(logits, logit_ref, atol=1e-4, rtol=1e-4)
    print("KERNEL_OK")
</pallas_src>

<mosaic_0001>
module attributes {stable_mosaic.version = 11 : i64} {
  func.func @_head_kernel(%arg0: i32, %arg1: memref<1x256x128xf32, #tpu.memory_space<vmem>>, %arg2: memref<256x128xf32, #tpu.memory_space<vmem>>, %arg3: memref<1xf32, #tpu.memory_space<smem>>, %arg4: memref<1x1x1xf32, #tpu.memory_space<vmem>>) attributes {dimension_semantics = [#tpu.dimension_semantics<parallel>], iteration_bounds = array<i64: 2>, scalar_prefetch = 0 : i64, scratch_operands = 0 : i64, tpu.core_type = #tpu.core_type<tc>, window_params = [{transform_indices = @transform_0, window_bounds = array<i64: 1, 256, 128>}, {pipeline_mode = #tpu.pipeline_mode<synchronous>, transform_indices = @transform_1, window_bounds = array<i64: 256, 128>}, {transform_indices = @transform_2, window_bounds = array<i64: 1>}, {transform_indices = @transform_3, window_bounds = array<i64: 1, 1, 1>}]} {
    %c0 = arith.constant 0 : index
    %c0_0 = arith.constant 0 : index
    %c0_1 = arith.constant 0 : index
    %0 = vector.load %arg1[%c0, %c0_0, %c0_1] : memref<1x256x128xf32, #tpu.memory_space<vmem>>, vector<1x256x128xf32>
    %c0_2 = arith.constant 0 : index
    %c0_3 = arith.constant 0 : index
    %1 = vector.load %arg2[%c0_2, %c0_3] : memref<256x128xf32, #tpu.memory_space<vmem>>, vector<256x128xf32>
    %2 = vector.shape_cast %1 : vector<256x128xf32> to vector<1x256x128xf32>
    %3 = arith.mulf %0, %2 : vector<1x256x128xf32>
    %cst = arith.constant dense<0.000000e+00> : vector<1x256xf32>
    %4 = vector.multi_reduction <add>, %3, %cst [2] : vector<1x256x128xf32> to vector<1x256xf32>
    %5 = vector.shape_cast %4 : vector<1x256xf32> to vector<1x256x1xf32>
    %cst_4 = arith.constant dense<0.000000e+00> : vector<1x1xf32>
    %6 = vector.multi_reduction <add>, %5, %cst_4 [1] : vector<1x256x1xf32> to vector<1x1xf32>
    %7 = vector.shape_cast %6 : vector<1x1xf32> to vector<1x1x1xf32>
    %c0_5 = arith.constant 0 : index
    %8 = memref.load %arg3[%c0_5] : memref<1xf32, #tpu.memory_space<smem>>
    %9 = vector.broadcast %8 : f32 to vector<1x1x1xf32>
    %10 = arith.addf %7, %9 : vector<1x1x1xf32>
    %c0_6 = arith.constant 0 : index
    %c0_7 = arith.constant 0 : index
    %c0_8 = arith.constant 0 : index
    %11 = vector.load %arg4[%c0_6, %c0_7, %c0_8] : memref<1x1x1xf32, #tpu.memory_space<vmem>>, vector<1x1x1xf32>
    tpu.vector_store %arg4[%c0_6, %c0_7, %c0_8], %10 {strides = array<i32>} : memref<1x1x1xf32, #tpu.memory_space<vmem>>, vector<1x1x1xf32>,
    return
  }
  func.func @transform_0(%arg0: i32) -> (i32, i32, i32) {
    %c0_i32 = arith.constant 0 : i32
    %c0_i32_0 = arith.constant 0 : i32
    %c0_i32_1 = arith.constant 0 : i32
    return %arg0, %c0_i32, %c0_i32_0 : i32, i32, i32
  }
  func.func @transform_1(%arg0: i32) -> (i32, i32) {
    %c0_i32 = arith.constant 0 : i32
    %c0_i32_0 = arith.constant 0 : i32
    %c0_i32_1 = arith.constant 0 : i32
    return %c0_i32, %c0_i32_0 : i32, i32
  }
  func.func @transform_2(%arg0: i32) -> i32 {
    %c0_i32 = arith.constant 0 : i32
    %c0_i32_0 = arith.constant 0 : i32
    return %c0_i32 : i32
  }
  func.func @transform_3(%arg0: i32) -> (i32, i32, i32) {
    %c0_i32 = arith.constant 0 : i32
    %c0_i32_0 = arith.constant 0 : i32
    %c0_i32_1 = arith.constant 0 : i32
    return %arg0, %c0_i32, %c0_i32_0 : i32, i32, i32
  }
}

</mosaic_0001>

<bundles_post_ra>
// kernel: tpu_custom_call.1
= control target key start
LH: loop header
LB: loop body
LE: loop exit
PB: predicated region body
PF: predicated region fallthrough
CT: control target
= control target key end

     0   :  { %s812_s0 = inlined_call_operand.hbm [shape: f32[2,256,128], index: 0, kind: input, shape index: {}]   ;;  %s813_s1 = inlined_call_operand.hbm [shape: f32[256,128], index: 1, kind: input, shape index: {}]   ;;  %s814_s2 = inlined_call_operand.<no memory space> [shape: f32[1], index: 2, kind: input, shape index: {}]   ;;  %s815_s3 = inlined_call_operand.vmem [shape: f32[2,1,1], index: 3, kind: output, shape index: {}]  }
   0x1   :  { %8 = sst [smem:[#allocation2]] %s814_s2 }
   0x2   :  { %9 = vsyncpa [#allocation4], 0 }
   0x3   :  { %11 = vsyncpa [#allocation4 + $0x1], 0 }
   0x4   :  { %12 = vsyncpa [#allocation6], 0  ;;  %s669_s14 = smov 0   ;;  %s671_s15 = smov 0  }
   0x5   :  { %s673_s16 = smov 0   ;;  %s675_s17 = smov 0  }
   0x6 LB: > { %s688_s2 = sadd.s32 4294967295, %s641_s17   ;;  %p38_p0 = scmp.ne.s32.totalorder %s633_s15, %s629_s14  ;;  %s641_s17 = sphi %s675_s17, %s822_s17   ;;  %s637_s16 = sphi %s673_s16, %s821_s16   ;;  %s633_s15 = sphi %s671_s15, %s820_s15   ;;  %s629_s14 = sphi %s669_s14, %s819_s14  }
   0x7   : > { %p39_p1 = scmp.eq.s32.totalorder %s688_s2, 0  ;;  %p479_p2 = scmp.ge.s32.totalorder %s641_s17, 1 }
   0x8   : > { %p117_p3 = scmp.lt.s32.totalorder %s641_s17, 3  ;;  %s128_s21 = sshll.u32 %s813_s1, 4  ;;  %s129_s21 = int_to_ptr.hbm [resolvable:$true] %s128_s21 }
   0x9   : > { %p696_p4 = por %p39_p1, %p38_p0  ;;  %s643_s23 = smov [#allocation5]  }
   0xa   : > { %p703_p5 = pnand %p479_p2, %p117_p3  ;;  %s130_s24 = sshll.u32 %s643_s23, 4  ;;  %s131_s24 = int_to_ptr.vmem [resolvable:$true] %s130_s24 }
   0xb   : > { %s712_s25 = sadd.s32 1, %s641_s17   ;;  %s644_s26 = smov 128  }
   0xc   : > { %p497_p6 = pneg %p703_p5  ;;  %s645_s27 = smov 8  }
   0xd   : > { %s22_s28 = ssub.s32 %s641_s17, %s712_s25  ;;  %s25_s29 = sadd.s32 1, %s637_s16 }
   0xe   : > { %p498_p7 = pnand %p497_p6, %p39_p1  ;;  %p23_p8 = scmp.eq.s32.totalorder %s22_s28, 0 }
   0xf   : > { %p32_p9 = scmp.ne.s32.totalorder %s637_s16, %s633_s15  ;;  %p33_p10 = scmp.eq.s32.totalorder %s641_s17, 0 }
  0x10   : > { %500 = dma.hbm_to_vmem [thread:$0]  (!%p498_p7), %s129_s21, 4096, %s131_s24, [#allocation6], %s644_s26, %s644_s26, %s645_s27  }
  0x11   : > { %p506_p11 = scmp.lt.s32.totalorder %s641_s17, 2  ;;  %p34_p12 = por %p33_p10, %p32_p9 }
  0x12   : > { %s725_s30 = scalar_select %p23_p8, %s637_s16, %s25_s29  }
  0x13   : > { %s147_s4 = sand.u32 1, %s637_s16   ;;  %s490_s6 = sshll.u32 %s641_s17, 8 }
  0x14   : > { %s482_s5 = sshll.u32 %s147_s4, 8  ;;  %s156_s9 = scalar_lea.hbm %s812_s0, %s490_s6 }
  0x15   : > { %s151_s10 = scalar_lea.vmem [#allocation3], %s482_s5  ;;  %s157_s12 = sshll.u32 %s156_s9, 4  ;;  %s158_s12 = int_to_ptr.hbm [resolvable:$true] %s157_s12 }
  0x16   : > { %s159_s11 = sshll.u32 %s151_s10, 4  ;;  %p732_p13 = pnand %p506_p11, %p34_p12  ;;  %s160_s11 = int_to_ptr.vmem [resolvable:$true] %s159_s11 }
  0x17   : > { %s148_s14 = scalar_lea.sflag [#allocation4], %s147_s4  ;;  %s573_s19 = sshra.s32 %s158_s12, 4  ;;  %s574_s19 = int_to_ptr.hbm [resolvable:$true] %s573_s19 }
  0x18   : > { %s575_s20 = scalar_lea.hbm %s574_s19, 256  ;;  %p577_p2 = pneg %p732_p13 }
  0x19   : > { %p576_p0 = scmp.ne.s32.totalorder %s574_s19, %s575_s20  ;;  %s580_s23 = scalar_lea.hbm %s812_s0, 512 }
  0x1a   : > { %p581_p7 = scmp.lt.s32.totalorder %s574_s19, %s812_s0  ;;  %p582_p8 = scmp.lt.s32.totalorder %s580_s23, %s575_s20 }
  0x1b   : > { %p578_p3 = pnand %p577_p2, %p576_p0 }
  0x1c   : > { %p583_p9 = por %p582_p8, %p581_p7 }
  0x1d   : > { %p579_p6 = pneg %p578_p3 }
  0x1f   : > { %p584_p10 = pnand %p583_p9, %p579_p6 }
  0x21   : > { %587 = shalt.err (!%p584_p10)
}
  0x22   : > { %504 = dma.hbm_to_vmem [thread:$0]  (!%p732_p13), %s158_s12, 4096, %s160_s11, %s148_s14, %s644_s26, %s644_s26, %s645_s27  }
  0x23   : > { %171 = sbr.rel (%p703_p5) target bundleno = 262 (0x106), region = 32  ;;  %s173_s29 = sand.u32 (!%p703_p5), 1, %s633_s15  }
  0x24   : > { %s486_s4 = sshll.u32 (!%p703_p5), %s173_s29, 8  ;;  %s174_s5 = scalar_lea.sflag (!%p703_p5), [#allocation4], %s173_s29 }
  0x25   : > { %s752_s6 = scalar_lea.vmem (!%p703_p5), [#allocation3], %s486_s4 }
  0x28   : > { %620 = dma.done.wait (%p696_p4), %s174_s5, 4096  }
  0x29   : > { %622 = vsyncadd (%p696_p4), %s174_s5, 4294963200 }
  0x2a   : > { %624 = dma.done.wait (%p39_p1), [#allocation6], 4096  }
  0x2b   : > { %626 = vsyncadd (%p39_p1), [#allocation6], 4294963200  ;;  %v207_v0 = vld [vmem:[%s752_s6] sm:$0xff]  ;;  %v209_v2 = vld [vmem:[%s752_s6 + $0x10] sm:$0xff]  ;;  %s404_s18 = sld [smem:[#allocation2]]  ;;  %p204_p1 = scmp.lt.s32.totalorder %s688_s2, 1 }
  0x2c   : > { %v239_v1 = vld [vmem:[#allocation5] sm:$0xff]  ;;  %v241_v4 = vld [vmem:[#allocation5 + $0x10] sm:$0xff]  ;;  %v208_v9 = vld [vmem:[%s752_s6 + $0x8] sm:$0xff]  ;;  %vm407_vm0 = vcmask 0  }
  0x2d   : > { %v271_v3 = vmul.f32 %v239_v1, %v207_v0  ;;  %v211_v5 = vld [vmem:[%s752_s6 + $0x20] sm:$0xff]  ;;  %v273_v7 = vmul.f32 %v241_v4, %v209_v2  ;;  %v240_v10 = vld [vmem:[#allocation5 + $0x8] sm:$0xff]  ;;  %v210_v11 = vld [vmem:[%s752_s6 + $0x18] sm:$0xff]  ;;  %s824_s2 = smov (!%p204_p1, %s688_s2), 1 }
  0x2e   : > { %v243_v6 = vld [vmem:[#allocation5 + $0x20] sm:$0xff]  ;;  %v242_v12 = vld [vmem:[#allocation5 + $0x18] sm:$0xff]  ;;  %v212_v13 = vld [vmem:[%s752_s6 + $0x28] sm:$0xff]  ;;  %v272_v15 = vmul.f32 %v240_v10, %v208_v9  ;;  %s206_s27 = scalar_lea.vmem %s815_s3, %s824_s2 }
  0x2f   : > { %v275_v8 = vmul.f32 %v243_v6, %v211_v5  ;;  %303 = vadd.xlane.f32.xlu0 %v271_v3  ;;  %307 = vadd.xlane.f32.xlu1 %v273_v7  ;;  %v244_v14 = vld [vmem:[#allocation5 + $0x28] sm:$0xff]  ;;  %v274_v16 = vmul.f32 %v242_v12, %v210_v11  ;;  %v213_v18 = vld [vmem:[%s752_s6 + $0x30] sm:$0xff]  ;;  %v214_v20 = vld [vmem:[%s752_s6 + $0x38] sm:$0xff] }
  0x30   : > { %v276_v17 = vmul.f32 %v244_v14, %v212_v13  ;;  %v245_v19 = vld [vmem:[#allocation5 + $0x30] sm:$0xff]  ;;  %v246_v21 = vld [vmem:[#allocation5 + $0x38] sm:$0xff]  ;;  %v215_v22 = vld [vmem:[%s752_s6 + $0x40] sm:$0xff] }
  0x31   : > { %311 = vadd.xlane.f32.xlu2 %v275_v8  ;;  %v247_v23 = vld [vmem:[#allocation5 + $0x40] sm:$0xff]  ;;  %v277_v24 = vmul.f32 %v245_v19, %v213_v18  ;;  %v278_v25 = vmul.f32 %v246_v21, %v214_v20  ;;  %v216_v27 = vld [vmem:[%s752_s6 + $0x48] sm:$0xff]  ;;  %v217_v29 = vld [vmem:[%s752_s6 + $0x50] sm:$0xff] }
  0x32   : > { %v279_v26 = vmul.f32 %v247_v23, %v215_v22  ;;  %v248_v28 = vld [vmem:[#allocation5 + $0x48] sm:$0xff]  ;;  %v249_v30 = vld [vmem:[#allocation5 + $0x50] sm:$0xff]  ;;  %v218_v31 = vld [vmem:[%s752_s6 + $0x58] sm:$0xff] }
  0x33   : > { %v250_v32 = vld [vmem:[#allocation5 + $0x58] sm:$0xff]  ;;  %v280_v33 = vmul.f32 %v248_v28, %v216_v27  ;;  %v281_v34 = vmul.f32 %v249_v30, %v217_v29  ;;  %v219_v36 = vld [vmem:[%s752_s6 + $0x60] sm:$0xff]  ;;  %v220_v38 = vld [vmem:[%s752_s6 + $0x68] sm:$0xff] }
  0x34   : > { %v282_v35 = vmul.f32 %v250_v32, %v218_v31  ;;  %v251_v37 = vld [vmem:[#allocation5 + $0x60] sm:$0xff]  ;;  %v252_v39 = vld [vmem:[#allocation5 + $0x68] sm:$0xff]  ;;  %v221_v40 = vld [vmem:[%s752_s6 + $0x70] sm:$0xff] }
  0x35   : > { %v253_v41 = vld [vmem:[#allocation5 + $0x70] sm:$0xff]  ;;  %v283_v42 = vmul.f32 %v251_v37, %v219_v36  ;;  %v284_v43 = vmul.f32 %v252_v39, %v220_v38  ;;  %v222_v45 = vld [vmem:[%s752_s6 + $0x78] sm:$0xff]  ;;  %v223_v47 = vld [vmem:[%s752_s6 + $0x80] sm:$0xff] }
  0x36   : > { %v285_v44 = vmul.f32 %v253_v41, %v221_v40  ;;  %v254_v46 = vld [vmem:[#allocation5 + $0x78] sm:$0xff]  ;;  %v255_v48 = vld [vmem:[#allocation5 + $0x80] sm:$0xff]  ;;  %v224_v49 = vld [vmem:[%s752_s6 + $0x88] sm:$0xff] }
  0x37   : > { %305 = vadd.xlane.f32.xlu0 %v272_v15  ;;  %309 = vadd.xlane.f32.xlu1 %v274_v16  ;;  %v256_v50 = vld [vmem:[#allocation5 + $0x88] sm:$0xff]  ;;  %v286_v51 = vmul.f32 %v254_v46, %v222_v45  ;;  %v287_v52 = vmul.f32 %v255_v48, %v223_v47  ;;  %v225_v54 = vld [vmem:[%s752_s6 + $0x90] sm:$0xff]  ;;  %v226_v56 = vld [vmem:[%s752_s6 + $0x98] sm:$0xff] }
  0x38   : > { %v288_v53 = vmul.f32 %v256_v50, %v224_v49  ;;  %v257_v55 = vld [vmem:[#allocation5 + $0x90] sm:$0xff]  ;;  %v258_v57 = vld [vmem:[#allocation5 + $0x98] sm:$0xff]  ;;  %v227_v58 = vld [vmem:[%s752_s6 + $0xa0] sm:$0xff] }
  0x39   : > { %313 = vadd.xlane.f32.xlu2 %v276_v17  ;;  %v259_v59 = vld [vmem:[#allocation5 + $0xa0] sm:$0xff]  ;;  %v289_v60 = vmul.f32 %v257_v55, %v225_v54  ;;  %v290_v61 = vmul.f32 %v258_v57, %v226_v56  ;;  %v228_v63 = vld [vmem:[%s752_s6 + $0xa8] sm:$0xff]  ;;  %v229_v1 = vld [vmem:[%s752_s6 + $0xb0] sm:$0xff] }
  0x3a   : > { %v291_v62 = vmul.f32 %v259_v59, %v227_v58  ;;  %v260_v0 = vld [vmem:[#allocation5 + $0xa8] sm:$0xff]  ;;  %v261_v2 = vld [vmem:[#allocation5 + $0xb0] sm:$0xff]  ;;  %v230_v3 = vld [vmem:[%s752_s6 + $0xb8] sm:$0xff] }
  0x3b   : > { %v262_v4 = vld [vmem:[#allocation5 + $0xb8] sm:$0xff]  ;;  %v292_v5 = vmul.f32 %v260_v0, %v228_v63  ;;  %v293_v6 = vmul.f32 %v261_v2, %v229_v1  ;;  %v231_v8 = vld [vmem:[%s752_s6 + $0xc0] sm:$0xff]  ;;  %v232_v10 = vld [vmem:[%s752_s6 + $0xc8] sm:$0xff] }
  0x3c   : > { %v294_v7 = vmul.f32 %v262_v4, %v230_v3  ;;  %v263_v9 = vld [vmem:[#allocation5 + $0xc0] sm:$0xff]  ;;  %v264_v11 = vld [vmem:[#allocation5 + $0xc8] sm:$0xff]  ;;  %v233_v12 = vld [vmem:[%s752_s6 + $0xd0] sm:$0xff] }
  0x3d   : > { %v265_v13 = vld [vmem:[#allocation5 + $0xd0] sm:$0xff]  ;;  %v295_v14 = vmul.f32 %v263_v9, %v231_v8  ;;  %v296_v15 = vmul.f32 %v264_v11, %v232_v10  ;;  %v234_v17 = vld [vmem:[%s752_s6 + $0xd8] sm:$0xff]  ;;  %v235_v19 = vld [vmem:[%s752_s6 + $0xe0] sm:$0xff] }
  0x3e   : > { %v297_v16 = vmul.f32 %v265_v13, %v233_v12  ;;  %v266_v18 = vld [vmem:[#allocation5 + $0xd8] sm:$0xff]  ;;  %v267_v20 = vld [vmem:[#allocation5 + $0xe0] sm:$0xff]  ;;  %v236_v21 = vld [vmem:[%s752_s6 + $0xe8] sm:$0xff] }
  0x3f   : > { %315 = vadd.xlane.f32.xlu0 %v277_v24  ;;  %317 = vadd.xlane.f32.xlu1 %v278_v25  ;;  %v268_v22 = vld [vmem:[#allocation5 + $0xe8] sm:$0xff]  ;;  %v298_v23 = vmul.f32 %v266_v18, %v234_v17  ;;  %v299_v24 = vmul.f32 %v267_v20, %v235_v19  ;;  %v269_v27 = vld [vmem:[#allocation5 + $0xf0] sm:$0xff]  ;;  %v238_v28 = vld [vmem:[%s752_s6 + $0xf8] sm:$0xff] }
  0x40   : > { %v300_v25 = vmul.f32 %v268_v22, %v236_v21  ;;  %v270_v29 = vld [vmem:[#allocation5 + $0xf8] sm:$0xff] }
  0x41   : > { %319 = vadd.xlane.f32.xlu2 %v279_v26  ;;  %v237_v26 = vld [vmem:[%s752_s6 + $0xf0] sm:$0xff]  ;;  %v302_v31 = vmul.f32 %v270_v29, %v238_v28 }
  0x42   : > { %v301_v30 = vmul.f32 %v269_v27, %v237_v26 }
  0x47   : > { %321 = vadd.xlane.f32.xlu0 %v280_v33  ;;  %323 = vadd.xlane.f32.xlu1 %v281_v34 }
  0x49   : > { %325 = vadd.xlane.f32.xlu2 %v282_v35 }
  0x4f   : > { %327 = vadd.xlane.f32.xlu0 %v283_v42  ;;  %329 = vadd.xlane.f32.xlu1 %v284_v43 }
  0x51   : > { %331 = vadd.xlane.f32.xlu2 %v285_v44 }
  0x57   : > { %333 = vadd.xlane.f32.xlu0 %v286_v51  ;;  %335 = vadd.xlane.f32.xlu1 %v287_v52 }
  0x59   : > { %337 = vadd.xlane.f32.xlu2 %v288_v53 }
  0x5f   : > { %339 = vadd.xlane.f32.xlu0 %v289_v60  ;;  %341 = vadd.xlane.f32.xlu1 %v290_v61 }
  0x61   : > { %343 = vadd.xlane.f32.xlu2 %v291_v62 }
  0x67   : > { %345 = vadd.xlane.f32.xlu0 %v292_v5  ;;  %347 = vadd.xlane.f32.xlu1 %v293_v6 }
  0x69   : > { %349 = vadd.xlane.f32.xlu2 %v294_v7 }
  0x6f   : > { %351 = vadd.xlane.f32.xlu0 %v295_v14  ;;  %353 = vadd.xlane.f32.xlu1 %v296_v15 }
  0x71   : > { %355 = vadd.xlane.f32.xlu2 %v297_v16 }
  0x77   : > { %357 = vadd.xlane.f32.xlu0 %v298_v23  ;;  %359 = vadd.xlane.f32.xlu1 %v299_v24 }
  0x79   : > { %361 = vadd.xlane.f32.xlu2 %v300_v25 }
  0x7f   : > { %363 = vadd.xlane.f32.xlu0 %v301_v30  ;;  %365 = vadd.xlane.f32.xlu1 %v302_v31 }
  0xa2   : > { %v304_v32 = vpop.xlane.xlu0 %303  ;;  %v308_v33 = vpop.xlane.xlu1 %307 }
  0xa4   : > { %v312_v34 = vpop.xlane.xlu2 %311 }
  0xaa   : > { %v306_v35 = vpop.xlane.xlu0 %305  ;;  %v310_v37 = vpop.xlane.xlu1 %309 }
  0xab   : > { %v367_v36 = vadd.f32 %v306_v35, %v304_v32 }
  0xac   : > { %v314_v38 = vpop.xlane.xlu2 %313 }
  0xad   : > { %v368_v39 = vadd.f32 %v367_v36, %v308_v33  ;;  %v405_v36 = vstv %s404_s18 }
  0xaf   : > { %v369_v40 = vadd.f32 %v368_v39, %v310_v37 }
  0xb1   : > { %v370_v41 = vadd.f32 %v369_v40, %v312_v34 }
  0xb2   : > { %v316_v42 = vpop.xlane.xlu0 %315  ;;  %v318_v44 = vpop.xlane.xlu1 %317 }
  0xb3   : > { %v371_v43 = vadd.f32 %v370_v41, %v314_v38 }
  0xb4   : > { %v320_v45 = vpop.xlane.xlu2 %319 }
  0xb5   : > { %v372_v46 = vadd.f32 %v371_v43, %v316_v42 }
  0xb7   : > { %v373_v47 = vadd.f32 %v372_v46, %v318_v44 }
  0xb9   : > { %v374_v48 = vadd.f32 %v373_v47, %v320_v45 }
  0xba   : > { %v322_v49 = vpop.xlane.xlu0 %321  ;;  %v324_v51 = vpop.xlane.xlu1 %323 }
  0xbb   : > { %v375_v50 = vadd.f32 %v374_v48, %v322_v49 }
  0xbc   : > { %v326_v52 = vpop.xlane.xlu2 %325 }
  0xbd   : > { %v376_v53 = vadd.f32 %v375_v50, %v324_v51 }
  0xbf   : > { %v377_v54 = vadd.f32 %v376_v53, %v326_v52 }
  0xc2   : > { %v328_v55 = vpop.xlane.xlu0 %327  ;;  %v330_v57 = vpop.xlane.xlu1 %329 }
  0xc3   : > { %v378_v56 = vadd.f32 %v377_v54, %v328_v55 }
  0xc4   : > { %v332_v58 = vpop.xlane.xlu2 %331 }
  0xc5   : > { %v379_v59 = vadd.f32 %v378_v56, %v330_v57 }
  0xc7   : > { %v380_v60 = vadd.f32 %v379_v59, %v332_v58 }
  0xca   : > { %v334_v61 = vpop.xlane.xlu0 %333  ;;  %v336_v63 = vpop.xlane.xlu1 %335 }
  0xcb   : > { %v381_v62 = vadd.f32 %v380_v60, %v334_v61 }
  0xcc   : > { %v338_v0 = vpop.xlane.xlu2 %337 }
  0xcd   : > { %v382_v1 = vadd.f32 %v381_v62, %v336_v63 }
  0xcf   : > { %v383_v2 = vadd.f32 %v382_v1, %v338_v0 }
  0xd2   : > { %v340_v3 = vpop.xlane.xlu0 %339  ;;  %v342_v5 = vpop.xlane.xlu1 %341 }
  0xd3   : > { %v384_v4 = vadd.f32 %v383_v2, %v340_v3 }
  0xd4   : > { %v344_v6 = vpop.xlane.xlu2 %343 }
  0xd5   : > { %v385_v7 = vadd.f32 %v384_v4, %v342_v5 }
  0xd7   : > { %v386_v8 = vadd.f32 %v385_v7, %v344_v6 }
  0xda   : > { %v346_v9 = vpop.xlane.xlu0 %345  ;;  %v348_v11 = vpop.xlane.xlu1 %347 }
  0xdb   : > { %v387_v10 = vadd.f32 %v386_v8, %v346_v9 }
  0xdc   : > { %v350_v12 = vpop.xlane.xlu2 %349 }
  0xdd   : > { %v388_v13 = vadd.f32 %v387_v10, %v348_v11 }
  0xdf   : > { %v389_v14 = vadd.f32 %v388_v13, %v350_v12 }
  0xe2   : > { %v352_v15 = vpop.xlane.xlu0 %351  ;;  %v354_v17 = vpop.xlane.xlu1 %353 }
  0xe3   : > { %v390_v16 = vadd.f32 %v389_v14, %v352_v15 }
  0xe4   : > { %v356_v18 = vpop.xlane.xlu2 %355 }
  0xe5   : > { %v391_v19 = vadd.f32 %v390_v16, %v354_v17 }
  0xe7   : > { %v392_v20 = vadd.f32 %v391_v19, %v356_v18 }
  0xea   : > { %v358_v21 = vpop.xlane.xlu0 %357  ;;  %v360_v23 = vpop.xlane.xlu1 %359 }
  0xeb   : > { %v393_v22 = vadd.f32 %v392_v20, %v358_v21 }
  0xec   : > { %v362_v25 = vpop.xlane.xlu2 %361 }
  0xed   : > { %v394_v24 = vadd.f32 %v393_v22, %v360_v23 }
  0xef   : > { %v395_v26 = vadd.f32 %v394_v24, %v362_v25 }
  0xf2   : > { %v364_v27 = vpop.xlane.xlu0 %363  ;;  %v366_v29 = vpop.xlane.xlu1 %365 }
  0xf3   : > { %v396_v28 = vadd.f32 %v395_v26, %v364_v27 }
  0xf5   : > { %v397_v30 = vadd.f32 %v396_v28, %v366_v29 }
  0xf7   : > { %v398_v31 = vrot.slane %v397_v30, 4 }
  0xf9   : > { %v399_v32 = vadd.f32 %v398_v31, %v397_v30 }
  0xfb   : > { %v400_v33 = vrot.slane %v399_v32, 2 }
  0xfd   : > { %v401_v34 = vadd.f32 %v400_v33, %v399_v32 }
  0xff   : > { %v402_v35 = vrot.slane %v401_v34, 1 }
 0x101   : > { %v403_v37 = vadd.f32 %v402_v35, %v401_v34 }
 0x103   : > { %v406_v38 = vadd.f32 %v405_v36, %v403_v37 }
 0x105   : > { %408 = vst.msk [vmem:[%s206_s27] sm:$0x1] %vm407_vm0, %v406_v38 }
 0x106 PF: > { %p15_p4 = scmp.ge.s32.totalorder %s712_s25, 4   ;;  %s819_s14 = smov %s633_s15 }
 0x107   : > { %s820_s15 = smov %s637_s16  ;;  %s821_s16 = smov %s725_s30 }
 0x108   : > { %s822_s17 = smov %s712_s25  ;;  %17 = sbr.rel (!%p15_p4) target bundleno = 6 (0x6), region = 76 }
 0x10d   :  { %426 = vsyncpa [#allocation4], 1 }
 0x10e   :  { %428 = vsyncpa [#allocation4 + $0x1], 1 }
 0x10f   :  { %429 = vsyncpa [#allocation6], 1 }

</bundles_post_ra>
